<compile_context>
chip_gen: v7x
topology: tpu7x:2x2x1
jax: 0.10.0
libtpu: 0.0.40
codegen_flags: <defaults>
</compile_context>

<pallas_src>
import numpy as np
import jax
import jax.numpy as jnp
from jax import lax
from jax.experimental import pallas as pl
from jax.experimental.pallas import tpu as pltpu

LANE_WIDTH = 128
OUT_LANES = 128          # lane-dense output width; expectations live in cols [:nq]


# --------------------------------------------------------------------------
# Host-side parameter glue (plain numpy): dense unitaries for the trainable
# StronglyEntanglingLayers blocks (input independent).
# --------------------------------------------------------------------------
def _rot_matrix(phi, theta, omega):
    c, s = np.cos(theta / 2), np.sin(theta / 2)
    return np.array(
        [[np.exp(-0.5j * (phi + omega)) * c, -np.exp(0.5j * (phi - omega)) * s],
         [np.exp(0.5j * (phi - omega)) * s,  np.exp(0.5j * (phi + omega)) * c]],
        dtype=np.complex128)


def _single_qubit_op(gate, wire, n):
    op = np.array([[1.0 + 0j]], dtype=np.complex128)
    for w in range(n):
        op = np.kron(op, gate if w == wire else np.eye(2, dtype=np.complex128))
    return op


def _cnot_op(control, target, n):
    D = 2 ** n
    U = np.zeros((D, D), dtype=np.complex128)
    for z in range(D):
        cbit = (z >> (n - 1 - control)) & 1
        znew = z ^ ((1 << (n - 1 - target)) if cbit else 0)
        U[znew, z] = 1.0
    return U


def _strongly_entangling_unitary(theta, n):
    """theta: (L, n, 3) -> dense (2^n, 2^n) unitary (PennyLane convention)."""
    L = theta.shape[0]
    D = 2 ** n
    U = np.eye(D, dtype=np.complex128)
    for l in range(L):
        for i in range(n):
            g = _rot_matrix(theta[l, i, 0], theta[l, i, 1], theta[l, i, 2])
            U = _single_qubit_op(g, i, n) @ U
        if n > 1:
            r = (l % (n - 1)) + 1
            for i in range(n):
                U = _cnot_op(i, (i + r) % n, n) @ U
    return U


def _pack_block_unitaries(U_list, lanes):
    """[(D,D) complex] -> (n_blocks, lanes, lanes) f32 block-diag packed form."""
    D = U_list[0].shape[0]
    two_d = 2 * D
    assert lanes % two_d == 0
    rep = lanes // two_d
    packed = []
    for U in U_list:
        wp = np.block([[U.real.T, U.imag.T],
                       [-U.imag.T, U.real.T]]).astype(np.float32)   # (2D, 2D)
        wbig = np.zeros((lanes, lanes), np.float32)
        for r in range(rep):
            wbig[r * two_d:(r + 1) * two_d, r * two_d:(r + 1) * two_d] = wp
        packed.append(wbig)
    return np.stack(packed)


def _packed_zsign(n, lanes, out_lanes):
    """(lanes, out_lanes) table: replica-0 rows carry PauliZ signs, rest zero."""
    D = 2 ** n
    z = np.arange(D)
    zsign = np.stack([1.0 - 2.0 * ((z >> (n - 1 - i)) & 1) for i in range(n)],
                     axis=1).astype(np.float32)                     # (D, n)
    out = np.zeros((lanes, out_lanes), np.float32)
    out[:D, :n] = zsign         # real-amplitude slots of replica 0
    out[D:2 * D, :n] = zsign    # imag-amplitude slots of replica 0
    return out


# --------------------------------------------------------------------------
# Pallas kernel: full circuit simulation on the packed, replicated statevector.
# --------------------------------------------------------------------------
def quantum_kernel(x_ref, wbig_ref, zbig_ref, out_ref):
    TB, nq = x_ref.shape
    n_blocks, LANES, _ = wbig_ref.shape
    n_layers = n_blocks - 1
    D = 2 ** nq
    TWO_D = 2 * D

    # ---- lane-only constants, shape (1, LANES): never batch-broadcast ----
    lane = lax.broadcasted_iota(jnp.int32, (1, LANES), 1)
    lane_loc = lane & (TWO_D - 1)                       # index within one replica
    halfsign = jnp.where(lane_loc < D, 1.0, -1.0).astype(jnp.float32)  # +re | -im

    sel_a, shifts_a, shifts_b = [], [], []
    for q in range(nq):
        m = 1 << (nq - 1 - q)                           # bit-flip mask of wire q
        a, b = D + m, D - m                             # candidate lane rotations
        need = lane_loc ^ (D + m)                       # required source lane_loc
        sel_a.append(pltpu.roll(lane_loc, a, axis=1) == need)
        shifts_a.append(a)
        shifts_b.append(b)

    # ---- per-batch angles stay as (TB, nq); broadcast happens at use ----
    half = 0.5 * x_ref[...]
    cx = jnp.cos(half)                                  # (TB, nq)
    sx = jnp.sin(half)

    # |0...0> state, replicated across lanes: re[0] = 1 in every replica.
    psi = jnp.broadcast_to(
        jnp.where(lane_loc == 0, 1.0, 0.0).astype(jnp.float32), (TB, LANES))

    def layer(k, psi):
        # trainable StronglyEntanglingLayers block: one packed MXU matmul
        psi = jnp.dot(psi, wbig_ref[k], preferred_element_type=jnp.float32)
        # AngleEmbedding: RX(x_q) on every wire (data re-uploading)
        for q in range(nq):
            perm = jnp.where(sel_a[q],
                             pltpu.roll(psi, shifts_a[q], axis=1),
                             pltpu.roll(psi, shifts_b[q], axis=1))
            psi = cx[:, q:q + 1] * psi + sx[:, q:q + 1] * (halfsign * perm)
        return psi

    unroll = True if n_layers <= 8 else 2
    psi = lax.fori_loop(0, n_layers, layer, psi, unroll=unroll)

    # final trainable block
    psi = jnp.dot(psi, wbig_ref[n_layers], preferred_element_type=jnp.float32)

    # <Z_i> = sum_z |psi_z|^2 * sign(z, i)  (replica 0 only via zbig zero rows);
    # lane-dense (TB, 128) store, extra columns are zero.
    prob = psi * psi
    out_ref[...] = jnp.dot(prob, zbig_ref[...], preferred_element_type=jnp.float32)


def _pick_batch_tile(batch):
    """Batch tile: big enough to amortize per-step overhead, >=2 grid steps for
    large batches (v7x megacore), multiple of 8 sublanes when tiling."""
    if batch <= 128:
        return batch
    tb = min(512, pl.cdiv(batch, 2))
    return max(8, (tb // 8) * 8)


@jax.jit
def quantum_forward(x, wbig, zbig):
    B, nq = x.shape
    n_blocks, lanes, _ = wbig.shape
    TB = _pick_batch_tile(B)
    grid = (pl.cdiv(B, TB),)

    # explicit VMEM budget: weights double-buffered + psi/temporaries + IO
    vmem_bytes = (2 * (wbig.size + zbig.size) * 4
                  + 6 * TB * lanes * 4
                  + 2 * TB * (nq + OUT_LANES) * 4)
    vmem_limit = int(min(112 << 20, max(vmem_bytes + (4 << 20), 32 << 20)))

    out = pl.pallas_call(
        quantum_kernel,
        out_shape=jax.ShapeDtypeStruct((B, OUT_LANES), jnp.float32),
        grid=grid,
        in_specs=[
            pl.BlockSpec((TB, nq), lambda i: (i, 0)),
            pl.BlockSpec((n_blocks, lanes, lanes), lambda i: (0, 0, 0)),
            pl.BlockSpec((lanes, OUT_LANES), lambda i: (0, 0)),
        ],
        out_specs=pl.BlockSpec((TB, OUT_LANES), lambda i: (i, 0)),
        compiler_params=pltpu.CompilerParams(
            dimension_semantics=("parallel",),
            vmem_limit_bytes=vmem_limit),
    )(x, wbig, zbig)
    return out[:, :nq]


# --------------------------------------------------------------------------
# Pure numpy reference (independent complex-amplitude simulation).
# --------------------------------------------------------------------------
def reference_forward(x_np, U_list, n):
    D = 2 ** n
    B = x_np.shape[0]
    out = np.zeros((B, n))
    flip_idx = [np.arange(D) ^ (1 << (n - 1 - q)) for q in range(n)]
    for b in range(B):
        psi = np.zeros(D, dtype=np.complex128)
        psi[0] = 1.0
        for k in range(len(U_list) - 1):
            psi = U_list[k] @ psi
            for q in range(n):
                c = np.cos(x_np[b, q] / 2)
                s = np.sin(x_np[b, q] / 2)
                psi = c * psi - 1j * s * psi[flip_idx[q]]
        psi = U_list[-1] @ psi
        prob = np.abs(psi) ** 2
        for i in range(n):
            sign = 1 - 2 * ((np.arange(D) >> (n - 1 - i)) & 1)
            out[b, i] = np.sum(prob * sign)
    return out


# --------------------------------------------------------------------------
if __name__ == "__main__":
    input_dim = 4                     # n_qubits
    n_layers = 1
    n_trainable_block_layers = 3
    batch = 8

    n_qubits = input_dim
    D = 2 ** n_qubits
    lanes = max(LANE_WIDTH, 2 * D)
    assert lanes % (2 * D) == 0       # replica packing requirement (n_qubits <= 6 uses 128 lanes)

    key = jax.random.PRNGKey(0)
    kw, kx = jax.random.split(key)

    # deterministic parameter init: uniform(0, 2*pi), TorchLayer-style
    weights = jax.random.uniform(
        kw, (n_layers + 1, n_trainable_block_layers, n_qubits, 3),
        minval=0.0, maxval=2 * np.pi, dtype=jnp.float32)
    x = jax.random.uniform(kx, (batch, n_qubits),
                           minval=-np.pi, maxval=np.pi, dtype=jnp.float32)

    # Precompose trainable blocks into dense unitaries (parameter glue),
    # then pack into the real block-diagonal replicated form for the kernel.
    w_np = np.asarray(weights, dtype=np.float64)
    U_list = [_strongly_entangling_unitary(w_np[k], n_qubits)
              for k in range(n_layers + 1)]
    wbig = jnp.asarray(_pack_block_unitaries(U_list, lanes))
    zbig = jnp.asarray(_packed_zsign(n_qubits, lanes, OUT_LANES))

    out = quantum_forward(x, wbig, zbig)
    out = jax.block_until_ready(out)

    ref = reference_forward(np.asarray(x, dtype=np.float64), U_list, n_qubits)
    np.testing.assert_allclose(np.asarray(out), ref, atol=1e-4, rtol=1e-4)

    print("KERNEL_OK")
</pallas_src>

<mosaic_0001>
module attributes {stable_mosaic.version = 11 : i64} {
  func.func @quantum_kernel(%arg0: i32, %arg1: memref<8x4xf32, #tpu.memory_space<vmem>>, %arg2: memref<2x128x128xf32, #tpu.memory_space<vmem>>, %arg3: memref<128x128xf32, #tpu.memory_space<vmem>>, %arg4: memref<8x128xf32, #tpu.memory_space<vmem>>) attributes {dimension_semantics = [#tpu.dimension_semantics<parallel>], iteration_bounds = array<i64: 1>, scalar_prefetch = 0 : i64, scratch_operands = 0 : i64, tpu.core_type = #tpu.core_type<tc>, window_params = [{transform_indices = @transform_0, window_bounds = array<i64: 8, 4>}, {pipeline_mode = #tpu.pipeline_mode<synchronous>, transform_indices = @transform_1, window_bounds = array<i64: 2, 128, 128>}, {pipeline_mode = #tpu.pipeline_mode<synchronous>, transform_indices = @transform_2, window_bounds = array<i64: 128, 128>}, {transform_indices = @transform_3, window_bounds = array<i64: 8, 128>}]} {
    %0 = tpu.iota {dimensions = array<i32: 1>} : vector<1x128xi32>
    %c31_i32 = arith.constant 31 : i32
    %1 = vector.broadcast %c31_i32 : i32 to vector<1x128xi32>
    %2 = arith.andi %0, %1 : vector<1x128xi32>
    %c16_i32 = arith.constant 16 : i32
    %3 = vector.broadcast %c16_i32 : i32 to vector<1x128xi32>
    %4 = arith.cmpi slt, %2, %3 : vector<1x128xi32>
    %cst = arith.constant 1.000000e+00 : f32
    %cst_0 = arith.constant -1.000000e+00 : f32
    %5 = vector.broadcast %cst : f32 to vector<1x128xf32>
    %6 = vector.broadcast %cst_0 : f32 to vector<1x128xf32>
    %7 = arith.select %4, %5, %6 : vector<1x128xi1>, vector<1x128xf32>
    %c24_i32 = arith.constant 24 : i32
    %8 = vector.broadcast %c24_i32 : i32 to vector<1x128xi32>
    %9 = arith.xori %2, %8 : vector<1x128xi32>
    %c24_i32_1 = arith.constant 24 : i32
    %10 = tpu.dynamic_rotate %2 by %c24_i32_1 dim 1 : vector<1x128xi32>, i32 -> vector<1x128xi32>
    %11 = arith.cmpi eq, %10, %9 : vector<1x128xi32>
    %c20_i32 = arith.constant 20 : i32
    %12 = vector.broadcast %c20_i32 : i32 to vector<1x128xi32>
    %13 = arith.xori %2, %12 : vector<1x128xi32>
    %c20_i32_2 = arith.constant 20 : i32
    %14 = tpu.dynamic_rotate %2 by %c20_i32_2 dim 1 : vector<1x128xi32>, i32 -> vector<1x128xi32>
    %15 = arith.cmpi eq, %14, %13 : vector<1x128xi32>
    %c18_i32 = arith.constant 18 : i32
    %16 = vector.broadcast %c18_i32 : i32 to vector<1x128xi32>
    %17 = arith.xori %2, %16 : vector<1x128xi32>
    %c18_i32_3 = arith.constant 18 : i32
    %18 = tpu.dynamic_rotate %2 by %c18_i32_3 dim 1 : vector<1x128xi32>, i32 -> vector<1x128xi32>
    %19 = arith.cmpi eq, %18, %17 : vector<1x128xi32>
    %c17_i32 = arith.constant 17 : i32
    %20 = vector.broadcast %c17_i32 : i32 to vector<1x128xi32>
    %21 = arith.xori %2, %20 : vector<1x128xi32>
    %c17_i32_4 = arith.constant 17 : i32
    %22 = tpu.dynamic_rotate %2 by %c17_i32_4 dim 1 : vector<1x128xi32>, i32 -> vector<1x128xi32>
    %23 = arith.cmpi eq, %22, %21 : vector<1x128xi32>
    %c0 = arith.constant 0 : index
    %c0_5 = arith.constant 0 : index
    %24 = vector.load %arg1[%c0, %c0_5] : memref<8x4xf32, #tpu.memory_space<vmem>>, vector<8x4xf32>
    %cst_6 = arith.constant 5.000000e-01 : f32
    %25 = vector.broadcast %cst_6 : f32 to vector<8x4xf32>
    %26 = arith.mulf %25, %24 : vector<8x4xf32>
    %27 = math.cos %26 : vector<8x4xf32>
    %28 = math.sin %26 : vector<8x4xf32>
    %c0_i32 = arith.constant 0 : i32
    %29 = vector.broadcast %c0_i32 : i32 to vector<1x128xi32>
    %30 = arith.cmpi eq, %2, %29 : vector<1x128xi32>
    %cst_7 = arith.constant 1.000000e+00 : f32
    %cst_8 = arith.constant 0.000000e+00 : f32
    %31 = vector.broadcast %cst_7 : f32 to vector<1x128xf32>
    %32 = vector.broadcast %cst_8 : f32 to vector<1x128xf32>
    %33 = arith.select %30, %31, %32 : vector<1x128xi1>, vector<1x128xf32>
    %34 = vector.shape_cast %33 : vector<1x128xf32> to vector<1x128xf32>
    %35 = vector.broadcast %34 : vector<1x128xf32> to vector<8x128xf32>
    %c0_i32_9 = arith.constant 0 : i32
    %36 = arith.index_cast %c0_i32_9 : i32 to index
    %c0_10 = arith.constant 0 : index
    %c0_11 = arith.constant 0 : index
    %37 = vector.load %arg2[%36, %c0_10, %c0_11] : memref<2x128x128xf32, #tpu.memory_space<vmem>>, vector<1x128x128xf32>
    %38 = vector.shape_cast %37 : vector<1x128x128xf32> to vector<128x128xf32>
    %cst_12 = arith.constant dense<0.000000e+00> : vector<8x128xf32>
    %39 = tpu.matmul %35, %38, %cst_12 {dimension_numbers = #tpu.dot_dimension_numbers<[1], [0], [0], [1], [0, 0, 1, 1], [], []>} : vector<8x128xf32>, vector<128x128xf32>, vector<8x128xf32> -> vector<8x128xf32>
    %c24_i32_13 = arith.constant 24 : i32
    %40 = tpu.dynamic_rotate %39 by %c24_i32_13 dim 1 : vector<8x128xf32>, i32 -> vector<8x128xf32>
    %c8_i32 = arith.constant 8 : i32
    %41 = tpu.dynamic_rotate %39 by %c8_i32 dim 1 : vector<8x128xf32>, i32 -> vector<8x128xf32>
    %42 = vector.shape_cast %11 : vector<1x128xi1> to vector<1x128xi1>
    %43 = vector.broadcast %42 : vector<1x128xi1> to vector<8x128xi1>
    %44 = arith.select %43, %40, %41 : vector<8x128xi1>, vector<8x128xf32>
    %45 = vector.extract_strided_slice %27 {offsets = [0, 0], sizes = [8, 1], strides = [1, 1]} : vector<8x4xf32> to vector<8x1xf32>
    %46 = vector.broadcast %45 : vector<8x1xf32> to vector<8x128xf32>
    %47 = arith.mulf %46, %39 : vector<8x128xf32>
    %48 = vector.extract_strided_slice %28 {offsets = [0, 0], sizes = [8, 1], strides = [1, 1]} : vector<8x4xf32> to vector<8x1xf32>
    %49 = vector.broadcast %7 : vector<1x128xf32> to vector<8x128xf32>
    %50 = arith.mulf %49, %44 : vector<8x128xf32>
    %51 = vector.broadcast %48 : vector<8x1xf32> to vector<8x128xf32>
    %52 = arith.mulf %51, %50 : vector<8x128xf32>
    %53 = arith.addf %47, %52 : vector<8x128xf32>
    %c20_i32_14 = arith.constant 20 : i32
    %54 = tpu.dynamic_rotate %53 by %c20_i32_14 dim 1 : vector<8x128xf32>, i32 -> vector<8x128xf32>
    %c12_i32 = arith.constant 12 : i32
    %55 = tpu.dynamic_rotate %53 by %c12_i32 dim 1 : vector<8x128xf32>, i32 -> vector<8x128xf32>
    %56 = vector.shape_cast %15 : vector<1x128xi1> to vector<1x128xi1>
    %57 = vector.broadcast %56 : vector<1x128xi1> to vector<8x128xi1>
    %58 = arith.select %57, %54, %55 : vector<8x128xi1>, vector<8x128xf32>
    %59 = vector.extract_strided_slice %27 {offsets = [0, 1], sizes = [8, 1], strides = [1, 1]} : vector<8x4xf32> to vector<8x1xf32>
    %60 = vector.broadcast %59 : vector<8x1xf32> to vector<8x128xf32>
    %61 = arith.mulf %60, %53 : vector<8x128xf32>
    %62 = vector.extract_strided_slice %28 {offsets = [0, 1], sizes = [8, 1], strides = [1, 1]} : vector<8x4xf32> to vector<8x1xf32>
    %63 = vector.broadcast %7 : vector<1x128xf32> to vector<8x128xf32>
    %64 = arith.mulf %63, %58 : vector<8x128xf32>
    %65 = vector.broadcast %62 : vector<8x1xf32> to vector<8x128xf32>
    %66 = arith.mulf %65, %64 : vector<8x128xf32>
    %67 = arith.addf %61, %66 : vector<8x128xf32>
    %c18_i32_15 = arith.constant 18 : i32
    %68 = tpu.dynamic_rotate %67 by %c18_i32_15 dim 1 : vector<8x128xf32>, i32 -> vector<8x128xf32>
    %c14_i32 = arith.constant 14 : i32
    %69 = tpu.dynamic_rotate %67 by %c14_i32 dim 1 : vector<8x128xf32>, i32 -> vector<8x128xf32>
    %70 = vector.shape_cast %19 : vector<1x128xi1> to vector<1x128xi1>
    %71 = vector.broadcast %70 : vector<1x128xi1> to vector<8x128xi1>
    %72 = arith.select %71, %68, %69 : vector<8x128xi1>, vector<8x128xf32>
    %73 = vector.extract_strided_slice %27 {offsets = [0, 2], sizes = [8, 1], strides = [1, 1]} : vector<8x4xf32> to vector<8x1xf32>
    %74 = vector.broadcast %73 : vector<8x1xf32> to vector<8x128xf32>
    %75 = arith.mulf %74, %67 : vector<8x128xf32>
    %76 = vector.extract_strided_slice %28 {offsets = [0, 2], sizes = [8, 1], strides = [1, 1]} : vector<8x4xf32> to vector<8x1xf32>
    %77 = vector.broadcast %7 : vector<1x128xf32> to vector<8x128xf32>
    %78 = arith.mulf %77, %72 : vector<8x128xf32>
    %79 = vector.broadcast %76 : vector<8x1xf32> to vector<8x128xf32>
    %80 = arith.mulf %79, %78 : vector<8x128xf32>
    %81 = arith.addf %75, %80 : vector<8x128xf32>
    %c17_i32_16 = arith.constant 17 : i32
    %82 = tpu.dynamic_rotate %81 by %c17_i32_16 dim 1 : vector<8x128xf32>, i32 -> vector<8x128xf32>
    %c15_i32 = arith.constant 15 : i32
    %83 = tpu.dynamic_rotate %81 by %c15_i32 dim 1 : vector<8x128xf32>, i32 -> vector<8x128xf32>
    %84 = vector.shape_cast %23 : vector<1x128xi1> to vector<1x128xi1>
    %85 = vector.broadcast %84 : vector<1x128xi1> to vector<8x128xi1>
    %86 = arith.select %85, %82, %83 : vector<8x128xi1>, vector<8x128xf32>
    %87 = vector.extract_strided_slice %27 {offsets = [0, 3], sizes = [8, 1], strides = [1, 1]} : vector<8x4xf32> to vector<8x1xf32>
    %88 = vector.broadcast %87 : vector<8x1xf32> to vector<8x128xf32>
    %89 = arith.mulf %88, %81 : vector<8x128xf32>
    %90 = vector.extract_strided_slice %28 {offsets = [0, 3], sizes = [8, 1], strides = [1, 1]} : vector<8x4xf32> to vector<8x1xf32>
    %91 = vector.broadcast %7 : vector<1x128xf32> to vector<8x128xf32>
    %92 = arith.mulf %91, %86 : vector<8x128xf32>
    %93 = vector.broadcast %90 : vector<8x1xf32> to vector<8x128xf32>
    %94 = arith.mulf %93, %92 : vector<8x128xf32>
    %95 = arith.addf %89, %94 : vector<8x128xf32>
    %c1_i32 = arith.constant 1 : i32
    %c1 = arith.constant 1 : index
    %c0_17 = arith.constant 0 : index
    %c0_18 = arith.constant 0 : index
    %96 = vector.load %arg2[%c1, %c0_17, %c0_18] : memref<2x128x128xf32, #tpu.memory_space<vmem>>, vector<1x128x128xf32>
    %97 = vector.shape_cast %96 : vector<1x128x128xf32> to vector<128x128xf32>
    %cst_19 = arith.constant dense<0.000000e+00> : vector<8x128xf32>
    %98 = tpu.matmul %95, %97, %cst_19 {dimension_numbers = #tpu.dot_dimension_numbers<[1], [0], [0], [1], [0, 0, 1, 1], [], []>} : vector<8x128xf32>, vector<128x128xf32>, vector<8x128xf32> -> vector<8x128xf32>
    %99 = arith.mulf %98, %98 : vector<8x128xf32>
    %c0_20 = arith.constant 0 : index
    %c0_21 = arith.constant 0 : index
    %100 = vector.load %arg3[%c0_20, %c0_21] : memref<128x128xf32, #tpu.memory_space<vmem>>, vector<128x128xf32>
    %cst_22 = arith.constant dense<0.000000e+00> : vector<8x128xf32>
    %101 = tpu.matmul %99, %100, %cst_22 {dimension_numbers = #tpu.dot_dimension_numbers<[1], [0], [0], [1], [0, 0, 1, 1], [], []>} : vector<8x128xf32>, vector<128x128xf32>, vector<8x128xf32> -> vector<8x128xf32>
    %c0_23 = arith.constant 0 : index
    %c0_24 = arith.constant 0 : index
    %102 = vector.load %arg4[%c0_23, %c0_24] : memref<8x128xf32, #tpu.memory_space<vmem>>, vector<8x128xf32>
    tpu.vector_store %arg4[%c0_23, %c0_24], %101 {strides = array<i32>} : memref<8x128xf32, #tpu.memory_space<vmem>>, vector<8x128xf32>,
    return
  }
  func.func @transform_0(%arg0: i32) -> (i32, i32) {
    %c0_i32 = arith.constant 0 : i32
    %c0_i32_0 = arith.constant 0 : i32
    return %arg0, %c0_i32 : i32, i32
  }
  func.func @transform_1(%arg0: i32) -> (i32, i32, i32) {
    %c0_i32 = arith.constant 0 : i32
    %c0_i32_0 = arith.constant 0 : i32
    %c0_i32_1 = arith.constant 0 : i32
    %c0_i32_2 = arith.constant 0 : i32
    return %c0_i32, %c0_i32_0, %c0_i32_1 : i32, i32, i32
  }
  func.func @transform_2(%arg0: i32) -> (i32, i32) {
    %c0_i32 = arith.constant 0 : i32
    %c0_i32_0 = arith.constant 0 : i32
    %c0_i32_1 = arith.constant 0 : i32
    return %c0_i32, %c0_i32_0 : i32, i32
  }
  func.func @transform_3(%arg0: i32) -> (i32, i32) {
    %c0_i32 = arith.constant 0 : i32
    %c0_i32_0 = arith.constant 0 : i32
    return %arg0, %c0_i32 : i32, i32
  }
}

</mosaic_0001>

<bundles_post_ra>
// kernel: quantum_forward.1
= control target key start
LH: loop header
LB: loop body
LE: loop exit
PB: predicated region body
PF: predicated region fallthrough
CT: control target
= control target key end

     0   :  { %8 = vsyncpa [#allocation3], 0  ;;  %s1144_s0 = inlined_call_operand.vmem [shape: f32[8,4], index: 0, kind: input, shape index: {}]   ;;  %s1145_s1 = inlined_call_operand.hbm [shape: f32[2,128,128], index: 1, kind: input, shape index: {}]   ;;  %s1146_s2 = inlined_call_operand.hbm [shape: f32[128,128], index: 2, kind: input, shape index: {}]   ;;  %s1147_s3 = inlined_call_operand.vmem [shape: f32[8,128], index: 3, kind: output, shape index: {}]  }
   0x1   :  { %9 = vsyncpa [#allocation5], 0  ;;  %s962_s12 = smov [#allocation2]   ;;  %s914_s16 = scalar_lea.hbm %s1145_s1, 4096 }
   0x2   :  { %s17_s13 = sshll.u32 %s962_s12, 4  ;;  %p915_p0 = scmp.ne.s32.totalorder %s1145_s1, %s914_s16  ;;  %s18_s13 = int_to_ptr.vmem [resolvable:$true] %s17_s13 }
   0x3   :  { %p918_p1 = scmp.lt.u32.totalorder %s914_s16, %s1145_s1 }
   0x5   :  { %p920_p2 = pnand %p918_p1, %p915_p0 }
   0x7   :  { %923 = shalt.err (!%p920_p2)
}
   0x8   :  { %s924_s21 = scalar_lea.vmem %s18_s13, 4096  ;;  %p929_p4 = scmp.lt.s32.totalorder %s18_s13, %s18_s13 }
   0x9   :  { %p925_p3 = scmp.ne.s32.totalorder %s18_s13, %s924_s21  ;;  %p930_p5 = scmp.lt.s32.totalorder %s924_s21, %s924_s21 }
   0xb   :  { %p931_p6 = por %p930_p5, %p929_p4 }
   0xd   :  { %p932_p7 = pnand %p931_p6, %p925_p3 }
   0xf   :  { %935 = shalt.err (!%p932_p7)
}
  0x10   :  { %s963_s22 = smov 128   ;;  %s964_s23 = smov 8  }
  0x11   :  { %23 = dma.hbm_to_vmem [thread:$0]  %s1145_s1, 4096, %s18_s13, [#allocation3], %s963_s22, %s963_s22, %s964_s23  }
  0x12   :  { %s965_s26 = smov [#allocation4]   ;;  %s936_s30 = scalar_lea.hbm %s1146_s2, 2048 }
  0x13   :  { %s29_s27 = sshll.u32 %s965_s26, 4  ;;  %p937_p8 = scmp.ne.s32.totalorder %s1146_s2, %s936_s30  ;;  %s30_s27 = int_to_ptr.vmem [resolvable:$true] %s29_s27 }
  0x14   :  { %p940_p9 = scmp.lt.u32.totalorder %s936_s30, %s1146_s2 }
  0x16   :  { %p942_p10 = pnand %p940_p9, %p937_p8 }
  0x18   :  { %945 = shalt.err (!%p942_p10)
}
  0x19   :  { %s946_s8 = scalar_lea.vmem %s30_s27, 2048  ;;  %p951_p12 = scmp.lt.s32.totalorder %s30_s27, %s30_s27 }
  0x1a   :  { %p947_p11 = scmp.ne.s32.totalorder %s30_s27, %s946_s8  ;;  %p952_p13 = scmp.lt.s32.totalorder %s946_s8, %s946_s8 }
  0x1c   :  { %p953_p0 = por %p952_p13, %p951_p12 }
  0x1e   :  { %p954_p1 = pnand %p953_p0, %p947_p11 }
  0x20   :  { %957 = shalt.err (!%p954_p1)
}
  0x21   :  { %35 = dma.hbm_to_vmem [thread:$0]  %s1146_s2, 2048, %s30_s27, [#allocation5], %s963_s22, %s963_s22, %s964_s23  }
  0x22   :  { %958 = dma.done.wait [#allocation3], 4096  }
  0x23   :  { %959 = vsyncadd [#allocation3], 4294963200 }
  0x24   :  { %960 = dma.done.wait [#allocation5], 2048  }
  0x25   :  { %961 = vsyncadd [#allocation5], 4294965248  ;;  %v42_v0 = vlaneseq  ;;  %v966_v1 = vmov 0.0|0.0   ;;  %vm967_vm0 = vmmov 0   ;;  %v968_v2 = vmov 0.0   ;;  %s970_s2 = smov 24  }
  0x26   :  { %800 = vmatprep.subr.bf16.mxu0 %v966_v1  ;;  %727 = vmatprep.mubr.msk.f32.mxu0 %vm967_vm0, %v968_v2  ;;  %v969_v4 = vmov 0   ;;  %v274_v6 = vld [vmem:[#allocation2] sm:$0xff]  ;;  %v275_v7 = vld [vmem:[#allocation2 + $0x8] sm:$0xff]  ;;  %v276_v8 = vld [vmem:[#allocation2 + $0x10] sm:$0xff]  ;;  %v971_v39 = vmov 683565275  }
  0x27   :  { %v43_v3 = vand.u32 127, %v42_v0  ;;  %902 = vset.pattern.permute.xlu0 %v969_v4  ;;  %903 = vset.pattern.permute.xlu1 %v969_v4  ;;  %v801_v9 = vpack.c.bf16 %v275_v7, %v274_v6  ;;  %v277_v10 = vld [vmem:[#allocation2 + $0x18] sm:$0xff]  ;;  %v278_v12 = vld [vmem:[#allocation2 + $0x20] sm:$0xff]  ;;  %v279_v13 = vld [vmem:[#allocation2 + $0x28] sm:$0xff]  ;;  %v972_v41 = vmov 2475754826  }
  0x28   :  { %824 = vmatprep.subr.bf16.mxu1 %v966_v1  ;;  %762 = vmatprep.mubr.msk.f32.mxu1 %vm967_vm0, %v968_v2  ;;  %v804_v11 = vpack.c.bf16 %v277_v10, %v276_v8  ;;  %v63_v14 = vld [vmem:[%s1144_s0] sm:$0xff]  ;;  %v807_v16 = vpack.c.bf16 %v279_v13, %v278_v12  ;;  %v280_v17 = vld [vmem:[#allocation2 + $0x30] sm:$0xff]  ;;  %v281_v18 = vld [vmem:[#allocation2 + $0x38] sm:$0xff]  ;;  %v973_v43 = vmov 2131351028   ;;  %s979_s0 = smov 20  }
  0x29   :  { %v1043_v5 = vand.u32 31, %v43_v3  ;;  %802 = vmatpush3.bf16.msra.mxu0 %v801_v9  ;;  %v1051_v15 = vmul.f32 0.5, %v63_v14  ;;  %v810_v21 = vpack.c.bf16 %v281_v18, %v280_v17  ;;  %v282_v23 = vld [vmem:[#allocation2 + $0x40] sm:$0xff]  ;;  %v283_v24 = vld [vmem:[#allocation2 + $0x48] sm:$0xff]  ;;  %v284_v29 = vld [vmem:[#allocation2 + $0x50] sm:$0xff]  ;;  %s981_s12 = smov 18  }
  0x2a   :  { %803 = vmatprep.subr.bf16.mxu0 %v966_v1  ;;  %v813_v27 = vpack.c.bf16 %v283_v24, %v282_v23  ;;  %v285_v30 = vld [vmem:[#allocation2 + $0x58] sm:$0xff]  ;;  %v286_v32 = vld [vmem:[#allocation2 + $0x60] sm:$0xff]  ;;  %v287_v33 = vld [vmem:[#allocation2 + $0x68] sm:$0xff]  ;;  %v974_v46 = vmov 2102212464   ;;  %s984_s13 = smov 12  }
  0x2b   :  { %48 = vrot.lane.b32.xlu0 %v1043_v5, %s970_s2  ;;  %v68_v19 = vand.u32 2139095040, %v1051_v15  ;;  %v65_v22 = vand.u32 2147483647, %v1051_v15  ;;  %v816_v35 = vpack.c.bf16 %v285_v30, %v284_v29  ;;  %v819_v45 = vpack.c.bf16 %v287_v33, %v286_v32  ;;  %v288_v58 = vld [vmem:[#allocation2 + $0x70] sm:$0xff]  ;;  %v289_v59 = vld [vmem:[#allocation2 + $0x78] sm:$0xff]  ;;  %s985_s14 = smov 17  }
  0x2c   :  { %v975_v48 = vmov 920167782   ;;  %v976_v55 = vmov 1326507024   ;;  %v822_v10 = vpack.c.bf16 %v289_v59, %v288_v58  ;;  %vm272_vm6 = vcmp.eq.s32.totalorder %v1043_v5, 0  ;;  %s986_s15 = smov 14  }
  0x2d   :  { %805 = vmatpush3.bf16.msra.mxu0 %v804_v11  ;;  %v69_v20 = vshrl.u32 %v68_v19, 23  ;;  %v72_v28 = vand.u32 8388607, %v65_v22  ;;  %vm67_vm9 = vcmp.lt.s32.totalorder %v1051_v15, 0  ;;  %vm66_vm10 = vcmp.le.f32.partialorder %v65_v22, 0.7853982 }
  0x2e   :  { %806 = vmatprep.subr.bf16.mxu0 %v966_v1  ;;  %s987_s16 = smov 15  }
  0x2f   :  { %v635_v25 = vadd.s32 4294967169, %v69_v20  ;;  %v73_v36 = vor.u32 8388608, %v72_v28 }
  0x31   :  { %808 = vmatpush3.bf16.msra.mxu0 %v807_v16  ;;  %v75_v26 = vadd.s32 1, %v635_v25  ;;  %v113_v57 = vshll.u32 %v73_v36, 8 }
  0x32   :  { %809 = vmatprep.subr.bf16.mxu0 %v966_v1 }
  0x33   :  { %vm76_vm1 = vcmp.gt.s32.totalorder %v75_v26, 0 }
  0x34   :  { %v77_v31 = vsel %vm76_vm1, %v75_v26, 0  ;;  %v977_v26 = vmov 1.0   ;;  %vm157_vm1 = vweird.f32 %v1051_v15 }
  0x35   :  { %811 = vmatpush3.bf16.msra.mxu0 %v810_v21  ;;  %v79_v34 = vand.u32 31, %v77_v31  ;;  %v78_v37 = vshrl.u32 %v77_v31, 5 }
  0x36   :  { %812 = vmatprep.subr.bf16.mxu0 %v966_v1 }
  0x37   :  { %v80_v38 = vsub.s32 32, %v79_v34  ;;  %v82_v40 = vshll.u32 %v971_v39, %v79_v34  ;;  %v85_v42 = vshll.u32 %v972_v41, %v79_v34  ;;  %v88_v44 = vshll.u32 %v973_v43, %v79_v34 }
  0x38   :  { %v91_v47 = vshll.u32 %v974_v46, %v79_v34  ;;  %v94_v49 = vshll.u32 %v975_v48, %v79_v34  ;;  %vm97_vm2 = vcmp.lt.s32.totalorder %v78_v37, 1  ;;  %vm100_vm3 = vcmp.lt.s32.totalorder %v78_v37, 4 }
  0x39   :  { %814 = vmatpush3.bf16.msra.mxu0 %v813_v27  ;;  %v81_v50 = vshrl.u32 %v971_v39, %v80_v38  ;;  %v83_v51 = vshrl.u32 %v972_v41, %v80_v38  ;;  %v86_v52 = vshrl.u32 %v973_v43, %v80_v38  ;;  %v89_v53 = vshrl.u32 %v974_v46, %v80_v38 }
  0x3a   :  { %815 = vmatprep.subr.bf16.mxu0 %v966_v1  ;;  %v92_v54 = vshrl.u32 %v975_v48, %v80_v38  ;;  %v95_v56 = vshrl.u32 %v976_v55, %v80_v38  ;;  %vm98_vm4 = vcmp.lt.s32.totalorder %v78_v37, 2  ;;  %vm99_vm5 = vcmp.lt.s32.totalorder %v78_v37, 3 }
  0x3b   :  { %v84_v60 = vor.u32 %v83_v51, %v82_v40  ;;  %v87_v61 = vor.u32 %v86_v52, %v85_v42  ;;  %v90_v62 = vor.u32 %v89_v53, %v88_v44 }
  0x3c   :  { %v93_v63 = vor.u32 %v92_v54, %v91_v47  ;;  %v96_v3 = vor.u32 %v95_v56, %v94_v49 }
  0x3d   :  { %817 = vmatpush3.bf16.msra.mxu0 %v816_v35  ;;  %v101_v6 = vsel %vm97_vm2, %v81_v50, %v84_v60  ;;  %v102_v7 = vsel %vm100_vm3, %v90_v62, 2102212464  ;;  %v105_v8 = vsel %vm97_vm2, %v84_v60, %v87_v61  ;;  %v109_v9 = vsel %vm97_vm2, %v87_v61, %v90_v62 }
  0x3e   :  { %818 = vmatprep.subr.bf16.mxu0 %v966_v1  ;;  %v103_v11 = vsel %vm99_vm5, %v87_v61, %v102_v7  ;;  %v106_v12 = vsel %vm100_vm3, %v93_v63, 920167782  ;;  %v110_v13 = vsel %vm100_vm3, %v96_v3, 1326507024  ;;  %vm45_vm3 = vcmp.lt.s32.totalorder %v1043_v5, 16 }
  0x3f   :  { %v107_v14 = vsel %vm99_vm5, %v90_v62, %v106_v12  ;;  %v111_v16 = vsel %vm99_vm5, %v93_v63, %v110_v13  ;;  %v104_v17 = vsel %vm98_vm4, %v101_v6, %v103_v11  ;;  %v978_v11 = vmov 1  }
  0x40   :  { %v108_v18 = vsel %vm98_vm4, %v105_v8, %v107_v14  ;;  %v112_v19 = vsel %vm98_vm4, %v109_v9, %v111_v16  ;;  %v120_v25 = vmul.u32 %v113_v57, %v104_v17  ;;  %v980_v13 = vmov 2  }
  0x41   :  { %820 = vmatpush3.bf16.msra.mxu0 %v819_v45  ;;  %v1069_v20 = vmul.u32.u64.low %v113_v57, %v112_v19  ;;  %v1070_v21 = vmul.u32.u64.high %v113_v57, %v112_v19, %v1069_v20  ;;  %v1072_v23 = vmul.u32.u64.low %v113_v57, %v108_v18  ;;  %v1073_v24 = vmul.u32.u64.high %v113_v57, %v108_v18, %v1072_v23 }
  0x42   :  { %821 = vmatprep.subr.bf16.mxu0 %v966_v1  ;;  %v47_v14 = vxor.u32 24, %v1043_v5  ;;  %v366_v16 = vshrl.u32 %v42_v0, 7 }
  0x43   :  { %vm122_vm7 = vc.u32 %v1070_v21, %v1072_v23  ;;  %v123_v27 = vadd.s32 1, %v1073_v24  ;;  %v121_v38 = vadd.s32 %v1072_v23, %v1070_v21 }
  0x44   :  { %v1098_v19 = vsub.s32 0, %v366_v16 }
  0x45   :  { %823 = vmatpush3.bf16.msra.mxu0 %v822_v10  ;;  %v124_v28 = vsel %vm122_vm7, %v123_v27, %v1073_v24  ;;  %v982_v24 = vmov -1.0  }
  0x46   :  { %848 = vmatprep.subr.bf16.mxu0 %v966_v1  ;;  %v125_v29 = vadd.s32 %v124_v28, %v120_v25  ;;  %v1105_v25 = vsel %vm45_vm3, 1.0, %v982_v24  ;;  %v542_v24 = vld [vmem:[#allocation4] sm:$0xff] }
  0x48   :  { %728 = vmatmul.mubr.msk.f32.vlgmr.msra.gmra.mrb[0].mxu0 %vm272_vm6, %v977_v26  ;;  %v126_v30 = vadd.s32 536870912, %v125_v29 }
  0x49   :  { %797 = vmatprep.mubr.msk.f32.mxu0 %vm967_vm0, %v968_v2 }
  0x4a   :  { %v127_v31 = vshrl.u32 %v126_v30, 30 }
  0x4c   :  { %v128_v32 = vshll.u32 %v127_v31, 30  ;;  %v151_v50 = vsub.s32 4, %v127_v31 }
  0x4e   :  { %v129_v33 = vsub.s32 %v125_v29, %v128_v32  ;;  %v152_v53 = vsel %vm67_vm9, %v151_v50, %v127_v31  ;;  %v983_v32 = vmov 3  }
  0x4f   :  { %v154_v55 = vsel %vm66_vm10, 0, %v152_v53 }
  0x50   :  { %v131_v34 = vsub.s32 0, %v129_v33  ;;  %v261_v56 = vadd.s32 3, %v154_v55  ;;  %v158_v57 = vand.u32 3, %v154_v55  ;;  %v462_v55 = vld [vmem:[#allocation2 + $0xb8] sm:$0xff] }
  0x52   :  { %v636_v35 = vmin.u32 %v131_v34, %v129_v33  ;;  %v262_v58 = vand.u32 3, %v261_v56  ;;  %vm163_vm11 = vcmp.eq.s32.totalorder %v158_v57, 2  ;;  %vm160_vm13 = vcmp.eq.s32.totalorder %v158_v57, 0 }
  0x53   :  { %vm159_vm15 = vcmp.lt.s32.totalorder %v158_v57, 2  ;;  %v463_v57 = vld [vmem:[#allocation2 + $0xc0] sm:$0xff] }
  0x54   :  { %v133_v36 = vclz %v636_v35  ;;  %vm267_vm12 = vcmp.eq.s32.totalorder %v262_v58, 2  ;;  %vm264_vm14 = vcmp.eq.s32.totalorder %v262_v58, 0  ;;  %vm263_vm0 = vcmp.lt.s32.totalorder %v262_v58, 2  ;;  %v464_v58 = vld [vmem:[#allocation2 + $0xc8] sm:$0xff] }
  0x56   :  { %v637_v37 = vadd.s32 4294967294, %v133_v36 }
  0x58   :  { %vm638_vm8 = vcmp.lt.s32.totalorder %v637_v37, 0 }
  0x59   :  { %v136_v39 = vsel %vm638_vm8, 0, %v637_v37 }
  0x5a   :  { %v137_v40 = vsub.s32 32, %v136_v39  ;;  %v138_v41 = vshll.u32 %v129_v33, %v136_v39  ;;  %v141_v42 = vsub.s32 4294967266, %v136_v39  ;;  %v51_v33 = vxor.u32 20, %v1043_v5 }
  0x5c   :  { %v139_v43 = vshrl.u32 %v121_v38, %v137_v40  ;;  %v142_v2 = vadd.s32 127, %v141_v42 }
  0x5e   :  { %v140_v44 = vor.u32 %v139_v43, %v138_v41  ;;  %v143_v45 = vshll.u32 %v142_v2, 23 }
  0x60   :  { %v144_v46 = vor.u32 4788187, %v143_v45  ;;  %v147_v47 = vcvt.s32.f32 %v140_v44  ;;  %v455_v45 = vld [vmem:[#allocation2 + $0x80] sm:$0xff] }
  0x62   :  { %v145_v48 = vand.u32 2147483647, %v144_v46  ;;  %v456_v46 = vld [vmem:[#allocation2 + $0x88] sm:$0xff] }
  0x64   :  { %v148_v49 = vmul.f32 %v147_v47, %v145_v48  ;;  %v457_v47 = vld [vmem:[#allocation2 + $0x90] sm:$0xff]  ;;  %v825_v48 = vpack.c.bf16 %v456_v46, %v455_v45 }
  0x66   :  { %v149_v51 = vxor.u32 2147483648, %v148_v49  ;;  %826 = vmatpush3.bf16.msra.mxu1 %v825_v48 }
  0x67   :  { %827 = vmatprep.subr.bf16.mxu1 %v966_v1 }
  0x68   :  { %v150_v52 = vsel %vm67_vm9, %v149_v51, %v148_v49  ;;  %v458_v49 = vld [vmem:[#allocation2 + $0x98] sm:$0xff]  ;;  %v459_v51 = vld [vmem:[#allocation2 + $0xa0] sm:$0xff] }
  0x69   :  { %v153_v54 = vsel %vm66_vm10, %v1051_v15, %v150_v52  ;;  %v828_v50 = vpack.c.bf16 %v458_v49, %v457_v47  ;;  %v460_v52 = vld [vmem:[#allocation2 + $0xa8] sm:$0xff] }
  0x6a   :  { %910 = vcosq.f32 %v153_v54  ;;  %v831_v53 = vpack.c.bf16 %v460_v52, %v459_v51 }
  0x6b   :  { %912 = vsinq.f32 %v153_v54  ;;  %829 = vmatpush3.bf16.msra.mxu1 %v828_v50  ;;  %v461_v54 = vld [vmem:[#allocation2 + $0xb0] sm:$0xff] }
  0x6c   :  { %830 = vmatprep.subr.bf16.mxu1 %v966_v1  ;;  %v834_v56 = vpack.c.bf16 %v462_v55, %v461_v54 }
  0x6f   :  { %832 = vmatpush3.bf16.msra.mxu1 %v831_v53 }
  0x70   :  { %833 = vmatprep.subr.bf16.mxu1 %v966_v1 }
  0x73   :  { %835 = vmatpush3.bf16.msra.mxu1 %v834_v56 }
  0x74   :  { %v911_v59 = vpop.eup %910  ;;  %836 = vmatprep.subr.bf16.mxu1 %v966_v1 }
  0x75   :  { %v913_v60 = vpop.eup %912  ;;  %v164_v61 = vxor.u32 2147483648, %v911_v59 }
  0x76   :  { %v161_v22 = vxor.u32 2147483648, %v913_v60 }
  0x77   :  { %v165_v62 = vsel %vm163_vm11, %v164_v61, %v913_v60  ;;  %v269_v63 = vsel %vm267_vm12, %v164_v61, %v913_v60  ;;  %v55_v60 = vxor.u32 18, %v1043_v5 }
  0x78   :  { %v162_v3 = vsel %vm160_vm13, %v911_v59, %v161_v22  ;;  %v266_v6 = vsel %vm264_vm14, %v911_v59, %v161_v22  ;;  %v837_v59 = vpack.c.bf16 %v464_v58, %v463_v57 }
  0x79   :  { %v166_v7 = vsel %vm159_vm15, %v162_v3, %v165_v62  ;;  %v270_v8 = vsel %vm263_vm0, %v266_v6, %v269_v63  ;;  %v465_v62 = vld [vmem:[#allocation2 + $0xd0] sm:$0xff]  ;;  %v466_v63 = vld [vmem:[#allocation2 + $0xd8] sm:$0xff] }
  0x7a   :  { %v1088_v9 = vsel %vm157_vm1, nan, %v166_v7  ;;  %v271_v10 = vsel %vm157_vm1, nan, %v270_v8  ;;  %838 = vmatpush3.bf16.msra.mxu1 %v837_v59  ;;  %v840_v6 = vpack.c.bf16 %v466_v63, %v465_v62 }
  0x7b   :  { %373 = vperm.xlu0 %902, %v1088_v9   ;;  %380 = vperm.xlu1 %903, %v271_v10  }
  0x7c   :  { %839 = vmatprep.subr.bf16.mxu1 %v966_v1 }
  0x7e   :  { %841 = vmatpush3.bf16.msra.mxu1 %v840_v6 }
  0x7f   :  { %904 = vset.pattern.permute.xlu1 %v978_v11  ;;  %905 = vset.pattern.permute.xlu0 %v978_v11 }
  0x80   :  { %52 = vrot.lane.b32.xlu0 %v1043_v5, %s979_s0  ;;  %842 = vmatprep.subr.bf16.mxu1 %v966_v1 }
  0x84   :  { %403 = vperm.xlu0 %905, %v271_v10  }
  0x88   :  { %907 = vset.pattern.permute.xlu0 %v980_v13 }
  0x89   :  { %56 = vrot.lane.b32.xlu0 %v1043_v5, %s981_s12 }
  0x8d   :  { %426 = vperm.xlu0 %907, %v271_v10  }
  0x91   :  { %909 = vset.pattern.permute.xlu0 %v983_v32 }
  0x92   :  { %60 = vrot.lane.b32.xlu0 %v1043_v5, %s985_s14 }
  0x96   :  { %449 = vperm.xlu0 %909, %v271_v10   ;;  %v468_v10 = vld [vmem:[#allocation2 + $0xe8] sm:$0xff] }
  0x9d   :  { %v49_v17 = vpop.permute.xlu0 %48 }
  0x9e   :  { %vm50_vm2 = vcmp.eq.s32.totalorder %v49_v17, %v47_v14 }
  0x9f   :  { %v364_v20 = vsel %vm50_vm2, 1, %v969_v4 }
  0xa0   :  { %v368_v21 = vrot.slane %v364_v20, %v1098_v19 }
  0xa2   :  { %vm369_vm4 = vcmp.eq.s32.totalorder %v368_v21, 1 }
  0xfa   :  { %v381_v18 = vpop.permute.xlu1 %380  ;;  %v374_v26 = vpop.permute.xlu0 %373 }
  0xfe   :  { %v53_v34 = vpop.permute.xlu0 %52 }
  0xff   :  { %vm54_vm5 = vcmp.eq.s32.totalorder %v53_v34, %v51_v33  ;;  %v548_v33 = vld [vmem:[#allocation4 + $0x30] sm:$0xff]  ;;  %v549_v34 = vld [vmem:[#allocation4 + $0x38] sm:$0xff] }
 0x100   :  { %v389_v36 = vsel %vm54_vm5, 1, %v969_v4 }
 0x101   :  { %v393_v37 = vrot.slane %v389_v36, %v1098_v19  ;;  %v550_v36 = vld [vmem:[#allocation4 + $0x40] sm:$0xff] }
 0x103   :  { %vm394_vm6 = vcmp.eq.s32.totalorder %v393_v37, 1  ;;  %v404_v41 = vpop.permute.xlu0 %403  ;;  %v551_v37 = vld [vmem:[#allocation4 + $0x48] sm:$0xff] }
 0x107   :  { %v57_v61 = vpop.permute.xlu0 %56 }
 0x108   :  { %vm58_vm7 = vcmp.eq.s32.totalorder %v57_v61, %v55_v60 }
 0x109   :  { %v412_v3 = vsel %vm58_vm7, 1, %v969_v4 }
 0x10a   :  { %v416_v7 = vrot.slane %v412_v3, %v1098_v19 }
 0x10c   :  { %vm417_vm8 = vcmp.eq.s32.totalorder %v416_v7, 1  ;;  %v427_v16 = vpop.permute.xlu0 %426 }
 0x110   :  { %v61_v45 = vpop.permute.xlu0 %60 }
 0x115   :  { %v450_v52 = vpop.permute.xlu0 %449 }
 0x11b   :  { %v356_v15 = vpop.f32.mrb[0].mxu0 }
 0x11c   :  { %v729_v12 = vpop.f32.mrb[1].mxu0  ;;  %360 = vrot.lane.b32.xlu1 %v356_v15, %s970_s2  ;;  %v376_v29 = vmul.f32 %v374_v26, %v356_v15  ;;  %v544_v26 = vld [vmem:[#allocation4 + $0x10] sm:$0xff] }
 0x11d   :  { %v469_v12 = vld [vmem:[#allocation2 + $0xf0] sm:$0xff] }
 0x120   :  { %362 = vrot.lane.b32.xlu1 %v356_v15, %s964_s23 }
 0x124   :  { %397 = vperm.xlu1 %904, %v1088_v9  }
 0x128   :  { %906 = vset.pattern.permute.xlu1 %v980_v13  ;;  %v470_v13 = vld [vmem:[#allocation2 + $0xf8] sm:$0xff] }
 0x129   :  { %v846_v17 = vpack.c.bf16 %v470_v13, %v469_v12 }
 0x18e   :  { %v361_v23 = vpop.permute.xlu1 %360 }
 0x192   :  { %v363_v0 = vpop.permute.xlu1 %362 }
 0x193   :  { %v370_v27 = vsel %vm369_vm4, %v361_v23, %v363_v0  ;;  %v543_v0 = vld [vmem:[#allocation4 + $0x8] sm:$0xff] }
 0x194   :  { %v377_v28 = vmul.f32 %v370_v27, %v1105_v25  ;;  %v849_v27 = vpack.c.bf16 %v543_v0, %v542_v24 }
 0x196   :  { %v383_v30 = vmul.f32 %v381_v18, %v377_v28  ;;  %v545_v28 = vld [vmem:[#allocation4 + $0x18] sm:$0xff]  ;;  %850 = vmatpush3.bf16.msra.mxu0 %v849_v27 }
 0x197   :  { %851 = vmatprep.subr.bf16.mxu0 %v966_v1 }
 0x198   :  { %v384_v31 = vadd.f32 %v383_v30, %v376_v29  ;;  %v852_v29 = vpack.c.bf16 %v545_v28, %v544_v26  ;;  %v546_v30 = vld [vmem:[#allocation4 + $0x20] sm:$0xff] }
 0x19a   :  { %385 = vrot.lane.b32.xlu1 %v384_v31, %s979_s0  ;;  %853 = vmatpush3.bf16.msra.mxu0 %v852_v29 }
 0x19b   :  { %854 = vmatprep.subr.bf16.mxu0 %v966_v1 }
 0x19e   :  { %387 = vrot.lane.b32.xlu1 %v384_v31, %s984_s13 }
 0x1a2   :  { %420 = vperm.xlu1 %906, %v1088_v9  }
 0x1a3   :  { %v398_v35 = vpop.permute.xlu1 %397 }
 0x1a4   :  { %v400_v43 = vmul.f32 %v398_v35, %v384_v31  ;;  %v547_v31 = vld [vmem:[#allocation4 + $0x28] sm:$0xff]  ;;  %v858_v35 = vpack.c.bf16 %v549_v34, %v548_v33 }
 0x1a6   :  { %908 = vset.pattern.permute.xlu1 %v983_v32  ;;  %v855_v32 = vpack.c.bf16 %v547_v31, %v546_v30 }
 0x1a8   :  { %856 = vmatpush3.bf16.msra.mxu0 %v855_v32 }
 0x1a9   :  { %857 = vmatprep.subr.bf16.mxu0 %v966_v1 }
 0x1ac   :  { %859 = vmatpush3.bf16.msra.mxu0 %v858_v35 }
 0x1ad   :  { %860 = vmatprep.subr.bf16.mxu0 %v966_v1 }
 0x20c   :  { %v386_v38 = vpop.permute.xlu1 %385 }
 0x210   :  { %v388_v39 = vpop.permute.xlu1 %387 }
 0x211   :  { %v395_v40 = vsel %vm394_vm6, %v386_v38, %v388_v39  ;;  %v861_v38 = vpack.c.bf16 %v551_v37, %v550_v36  ;;  %v552_v39 = vld [vmem:[#allocation4 + $0x50] sm:$0xff] }
 0x212   :  { %v401_v42 = vmul.f32 %v395_v40, %v1105_v25  ;;  %v553_v40 = vld [vmem:[#allocation4 + $0x58] sm:$0xff] }
 0x213   :  { %862 = vmatpush3.bf16.msra.mxu0 %v861_v38 }
 0x214   :  { %v406_v2 = vmul.f32 %v404_v41, %v401_v42  ;;  %v864_v41 = vpack.c.bf16 %v553_v40, %v552_v39  ;;  %863 = vmatprep.subr.bf16.mxu0 %v966_v1  ;;  %v554_v42 = vld [vmem:[#allocation4 + $0x60] sm:$0xff] }
 0x216   :  { %v407_v44 = vadd.f32 %v406_v2, %v400_v43  ;;  %v555_v43 = vld [vmem:[#allocation4 + $0x68] sm:$0xff] }
 0x217   :  { %865 = vmatpush3.bf16.msra.mxu0 %v864_v41  ;;  %v867_v2 = vpack.c.bf16 %v555_v43, %v554_v42 }
 0x218   :  { %408 = vrot.lane.b32.xlu1 %v407_v44, %s981_s12  ;;  %866 = vmatprep.subr.bf16.mxu0 %v966_v1 }
 0x21b   :  { %868 = vmatpush3.bf16.msra.mxu0 %v867_v2 }
 0x21c   :  { %410 = vrot.lane.b32.xlu1 %v407_v44, %s986_s15  ;;  %869 = vmatprep.subr.bf16.mxu0 %v966_v1 }
 0x220   :  { %443 = vperm.xlu1 %908, %v1088_v9   ;;  %v467_v9 = vld [vmem:[#allocation2 + $0xe0] sm:$0xff] }
 0x221   :  { %v421_v22 = vpop.permute.xlu1 %420  ;;  %v843_v11 = vpack.c.bf16 %v468_v10, %v467_v9 }
 0x222   :  { %v423_v20 = vmul.f32 %v421_v22, %v407_v44  ;;  %v59_v44 = vxor.u32 17, %v1043_v5  ;;  %v557_v5 = vld [vmem:[#allocation4 + $0x78] sm:$0xff] }
 0x223   :  { %844 = vmatpush3.bf16.msra.mxu1 %v843_v11 }
 0x224   :  { %845 = vmatprep.subr.bf16.mxu1 %v966_v1  ;;  %vm62_vm9 = vcmp.eq.s32.totalorder %v61_v45, %v59_v44  ;;  %v556_v1 = vld [vmem:[#allocation4 + $0x70] sm:$0xff] }
 0x225   :  { %v435_v47 = vsel %vm62_vm9, 1, %v969_v4  ;;  %v870_v57 = vpack.c.bf16 %v557_v5, %v556_v1 }
 0x226   :  { %v439_v48 = vrot.slane %v435_v47, %v1098_v19 }
 0x227   :  { %847 = vmatpush3.bf16.msra.mxu1 %v846_v17  ;;  %871 = vmatpush3.bf16.msra.mxu0 %v870_v57 }
 0x228   :  { %vm440_vm10 = vcmp.eq.s32.totalorder %v439_v48, 1 }
 0x28a   :  { %v409_v8 = vpop.permute.xlu1 %408 }
 0x28e   :  { %v411_v15 = vpop.permute.xlu1 %410 }
 0x28f   :  { %v418_v14 = vsel %vm417_vm8, %v409_v8, %v411_v15 }
 0x290   :  { %v424_v18 = vmul.f32 %v418_v14, %v1105_v25 }
 0x292   :  { %v429_v21 = vmul.f32 %v427_v16, %v424_v18 }
 0x294   :  { %v430_v23 = vadd.f32 %v429_v21, %v423_v20 }
 0x296   :  { %431 = vrot.lane.b32.xlu1 %v430_v23, %s985_s14 }
 0x29a   :  { %433 = vrot.lane.b32.xlu1 %v430_v23, %s987_s16 }
 0x29f   :  { %v444_v46 = vpop.permute.xlu1 %443 }
 0x2a0   :  { %v446_v54 = vmul.f32 %v444_v46, %v430_v23 }
 0x308   :  { %v432_v49 = vpop.permute.xlu1 %431 }
 0x30c   :  { %v434_v50 = vpop.permute.xlu1 %433 }
 0x30d   :  { %v441_v51 = vsel %vm440_vm10, %v432_v49, %v434_v50 }
 0x30e   :  { %v447_v53 = vmul.f32 %v441_v51, %v1105_v25 }
 0x310   :  { %v452_v55 = vmul.f32 %v450_v52, %v447_v53 }
 0x312   :  { %v453_v56 = vadd.f32 %v452_v55, %v446_v54 }
 0x314   :  { %763 = vmatmul.mubr.f32.vlgmr.msra.gmra.mrb[0].mxu1 %v453_v56 }
 0x3e7   :  { %v537_v58 = vpop.f32.mrb[0].mxu1 }
 0x3e8   :  { %v541_v59 = vmul.f32 %v537_v58, %v537_v58  ;;  %v764_v4 = vpop.f32.mrb[1].mxu1 }
 0x3ea   :  { %798 = vmatmul.mubr.f32.vlgmr.msra.gmra.mrb[2].mxu0 %v541_v59 }
 0x4bd   :  { %v624_v19 = vpop.f32.mrb[2].mxu0 }
 0x4be   :  { %628 = vst [vmem:[%s1147_s3] sm:$0xff] %v624_v19  ;;  %v799_v60 = vpop.f32.mrb[3].mxu0 }
 0x4bf   :  { %633 = vsyncpa [#allocation3], 1 }
 0x4c0   :  { %634 = vsyncpa [#allocation5], 1 }

</bundles_post_ra>
